<compile_context>
chip_gen: v7x
topology: tpu7x:2x2x1
jax: 0.10.0
libtpu: 0.0.40
codegen_flags: <defaults>
</compile_context>

<pallas_src>
import functools

import jax
import jax.numpy as jnp
from jax import lax
from jax.experimental import pallas as pl
from jax.experimental.pallas import tpu as pltpu

_LANE = 128          # lane width (channel padding granularity)

_VMEM_CAP = None     # cached VMEM capacity (bytes)


def _round_up(v, m):
    return (v + m - 1) // m * m


def _pad2d(a, rows, cols):
    pr, pc = rows - a.shape[0], cols - a.shape[1]
    if pr or pc:
        a = jnp.pad(a, ((0, pr), (0, pc)))
    return a


def _vmem_capacity_bytes():
    global _VMEM_CAP
    if _VMEM_CAP is None:
        try:
            cap = int(pltpu.get_tpu_info().vmem_capacity_bytes)
        except Exception:
            cap = 64 << 20               # conservative fallback (v7x per-TC)
        _VMEM_CAP = max(32 << 20, min(cap, 128 << 20))
    return _VMEM_CAP


def _vmem_budget():
    # Leave headroom for compiler-internal scratch / spills.
    return int(0.85 * _vmem_capacity_bytes())


def _vmem_estimate(tm, tk, c_in_p, c_out_p, x_bytes, c_bytes, o_bytes):
    """Approximate resident VMEM for one grid step (double-buffered I/O)."""
    return (2 * tm * c_in_p * x_bytes          # x tile
            + 2 * tk * c_in_p * c_bytes        # fc1 weight slice
            + 2 * tk * c_out_p * c_bytes       # fc2 weight slice
            + 2 * (tk + c_out_p) * 4           # bias slices (f32)
            + 2 * tm * c_out_p * o_bytes       # output tile
            + tm * c_out_p * 4                 # f32 accumulator scratch
            + tm * tk * 4                      # f32 pre-activation / GELU temp
            + tm * (c_in_p + tk) * c_bytes)    # in-kernel compute-dtype casts


def _select_tk(H, c_in_p, c_out_p, budget, *, nominal_tm=512,
               x_bytes=4, c_bytes=2, o_bytes=4):
    """Hidden-dim grid tile: 256-aligned (2x256^2 MXU on v6e/v7x), fits the
    VMEM budget at a nominal token tile, minimizes padded-H MXU waste."""
    h_hi = max(_round_up(H, 256), 256)
    best = None
    for j in range(1, min(h_hi // 256, 8) + 1):
        tk = 256 * j
        est = _vmem_estimate(nominal_tm, tk, c_in_p, c_out_p,
                             x_bytes, c_bytes, o_bytes)
        if tk > 256 and est * 1.25 > budget:
            continue
        key = (_round_up(H, tk), -tk)      # least padded H, then fewest steps
        if best is None or key < best[0]:
            best = (key, tk)
    return best[1]


def _select_tm(M, tk, c_in_p, c_out_p, budget, x_bytes, c_bytes, o_bytes):
    """Token tile: fits VMEM budget, minimizes row padding, prefers >=2 grid
    steps (both v7x TensorCores), then the largest tile (amortizes the
    ~0.35us per-grid-step overhead)."""
    if M <= 256:
        return _round_up(max(M, 8), 16)
    cands = (1024, 768, 512, 384, 256)
    fitting = [t for t in cands
               if _vmem_estimate(t, tk, c_in_p, c_out_p,
                                 x_bytes, c_bytes, o_bytes) * 1.25 <= budget]
    if not fitting:
        fitting = [256]

    def score(t):
        n_tiles = -(-M // t)
        pad = n_tiles * t - M
        return (1 if n_tiles == 1 else 0, pad, -t)

    return min(fitting, key=score)


def _mlp_kernel(x_ref, w1_ref, b1_ref, w2_ref, b2_ref, o_ref, acc_ref, *,
                approx_gelu):
    # x_ref:  (tm, C_in_p)      input dtype (cast to compute dtype in-kernel)
    # w1_ref: (C_in_p, tk)      compute dtype (bf16)   fc1 weight slice
    # b1_ref: (1, tk)           f32                    fc1 bias slice
    # w2_ref: (tk, C_out_p)     compute dtype          fc2 weight slice
    # b2_ref: (1, C_out_p)      f32                    fc2 bias
    # acc_ref:(tm, C_out_p)     f32 VMEM scratch accumulator
    k = pl.program_id(1)
    cd = w1_ref.dtype

    @pl.when(k == 0)
    def _():
        acc_ref[...] = jnp.zeros_like(acc_ref)

    x = x_ref[...].astype(cd)                                 # in-kernel cast
    h = jnp.dot(x, w1_ref[...], preferred_element_type=jnp.float32)   # MXU
    h = h + b1_ref[...]
    if approx_gelu:
        # tanh-approx GELU: tanh goes to the EUP slot, freeing the VALU
        # (useful on v6e/v7x where exact erf can become the binding unit).
        c0 = jnp.float32(0.7978845608028654)   # sqrt(2/pi)
        h = 0.5 * h * (1.0 + jnp.tanh(c0 * (h + 0.044715 * (h * h * h))))
    else:
        # Exact erf GELU — parity with torch.nn.GELU() default.
        h = 0.5 * h * (1.0 + lax.erf(h * jnp.float32(0.7071067811865475)))
    acc_ref[...] += jnp.dot(h.astype(cd), w2_ref[...],
                            preferred_element_type=jnp.float32)        # MXU

    @pl.when(k == pl.num_programs(1) - 1)
    def _():
        o_ref[...] = (acc_ref[...] + b2_ref[...]).astype(o_ref.dtype)


@functools.partial(jax.jit,
                   static_argnames=("c_out", "tk", "out_dtype", "approx_gelu"))
def _mlp_forward(x, w1_p, b1_p, w2_p, b2_p, *, c_out, tk, out_dtype,
                 approx_gelu):
    B, N, C_in = x.shape
    M = B * N
    C_in_p, H_p = w1_p.shape
    C_out_p = w2_p.shape[1]
    assert H_p % tk == 0

    x_bytes = jnp.dtype(x.dtype).itemsize
    c_bytes = jnp.dtype(w1_p.dtype).itemsize
    o_bytes = jnp.dtype(out_dtype).itemsize

    budget = _vmem_budget()
    tm = _select_tm(M, tk, C_in_p, C_out_p, budget, x_bytes, c_bytes, o_bytes)
    M_p = _round_up(M, tm)

    x2 = x.reshape(M, C_in)
    if M_p != M or C_in_p != C_in:
        # Only materializes for ragged shapes; aligned inputs (C_in % 128 == 0,
        # M % tm == 0) pass straight through (reshape is free).
        x2 = jnp.pad(x2, ((0, M_p - M), (0, C_in_p - C_in)))

    est = _vmem_estimate(tm, tk, C_in_p, C_out_p, x_bytes, c_bytes, o_bytes)
    vmem_limit = int(min(budget, max(32 << 20, int(1.4 * est))))

    grid = (M_p // tm, H_p // tk)

    out = pl.pallas_call(
        functools.partial(_mlp_kernel, approx_gelu=approx_gelu),
        out_shape=jax.ShapeDtypeStruct((M_p, C_out_p), out_dtype),
        grid_spec=pltpu.PrefetchScalarGridSpec(
            num_scalar_prefetch=0,
            grid=grid,
            in_specs=[
                pl.BlockSpec((tm, C_in_p), lambda i, k: (i, 0)),    # x tile
                pl.BlockSpec((C_in_p, tk), lambda i, k: (0, k)),    # fc1 W
                pl.BlockSpec((1, tk), lambda i, k: (0, k)),         # fc1 b
                pl.BlockSpec((tk, C_out_p), lambda i, k: (k, 0)),   # fc2 W
                pl.BlockSpec((1, C_out_p), lambda i, k: (0, 0)),    # fc2 b
            ],
            out_specs=pl.BlockSpec((tm, C_out_p), lambda i, k: (i, 0)),
            scratch_shapes=[pltpu.VMEM((tm, C_out_p), jnp.float32)],
        ),
        compiler_params=pltpu.CompilerParams(
            dimension_semantics=("parallel", "arbitrary"),
            vmem_limit_bytes=vmem_limit,
        ),
    )(x2, w1_p, b1_p, w2_p, b2_p)

    return out[:M, :c_out].reshape(B, N, c_out)


def prepare_mlp_params(w1, b1, w2, b2, *, compute_dtype=jnp.bfloat16, tk=None):
    """One-time pad + cast of fc1/fc2 parameters (hoisted out of the per-call
    path so steady-state calls add no extra HBM pad/convert passes)."""
    C_in, H = w1.shape
    H2, C_out = w2.shape
    assert H2 == H and b1.shape == (H,) and b2.shape == (C_out,)
    C_in_p = _round_up(C_in, _LANE)      # lane-dense channel padding
    C_out_p = _round_up(C_out, _LANE)
    if tk is None:
        tk = _select_tk(H, C_in_p, C_out_p, _vmem_budget(),
                        c_bytes=jnp.dtype(compute_dtype).itemsize)
    H_p = _round_up(H, tk)               # pad H to a multiple of the tile
    w1_p = _pad2d(jnp.asarray(w1), C_in_p, H_p).astype(compute_dtype)
    w2_p = _pad2d(jnp.asarray(w2), H_p, C_out_p).astype(compute_dtype)
    b1_p = _pad2d(jnp.asarray(b1, jnp.float32).reshape(1, H), 1, H_p)
    b2_p = _pad2d(jnp.asarray(b2, jnp.float32).reshape(1, C_out), 1, C_out_p)
    return {"w1": w1_p, "b1": b1_p, "w2": w2_p, "b2": b2_p,
            "c_out": int(C_out), "tk": int(tk)}


def mlp_apply(x, params, *, out_dtype=None, approx_gelu=False):
    """x: (B, N, C_in); params: output of prepare_mlp_params."""
    od = jnp.dtype(out_dtype) if out_dtype is not None else jnp.dtype(x.dtype)
    return _mlp_forward(x, params["w1"], params["b1"],
                        params["w2"], params["b2"],
                        c_out=params["c_out"], tk=params["tk"],
                        out_dtype=od, approx_gelu=bool(approx_gelu))


def mlp_pallas(x, w1, b1, w2, b2, *, compute_dtype=jnp.bfloat16,
               out_dtype=None, approx_gelu=False):
    """Convenience wrapper: prepares params and applies (prefer preparing once
    and reusing `mlp_apply` in steady state)."""
    params = prepare_mlp_params(w1, b1, w2, b2, compute_dtype=compute_dtype)
    return mlp_apply(x, params, out_dtype=out_dtype, approx_gelu=approx_gelu)


if __name__ == "__main__":
    # Small shapes consistent with Mlp applied to a (B, N, C) token tensor.
    B, N = 2, 8
    in_features, hidden_features, out_features = 16, 64, 16
    compute_dtype = jnp.bfloat16

    key = jax.random.PRNGKey(0)
    kx, k1, k2 = jax.random.split(key, 3)

    x = jax.random.normal(kx, (B, N, in_features), dtype=jnp.float32)
    # trunc_normal_-like init (std=0.02), zero biases.
    w1 = (0.02 * jax.random.truncated_normal(
        k1, -2.0, 2.0, (in_features, hidden_features))).astype(jnp.float32)
    b1 = jnp.zeros((hidden_features,), jnp.float32)
    w2 = (0.02 * jax.random.truncated_normal(
        k2, -2.0, 2.0, (hidden_features, out_features))).astype(jnp.float32)
    b2 = jnp.zeros((out_features,), jnp.float32)

    # One-time weight prep (pad + bf16 cast) hoisted out of the per-call path.
    params = prepare_mlp_params(w1, b1, w2, b2, compute_dtype=compute_dtype)

    # drop_rate = 0.0 in this instantiation, so Dropout is the identity.
    # TODO(synk): add pltpu.prng_* based dropout inside the kernel if drop_rate > 0.
    y = mlp_apply(x, params)
    jax.block_until_ready(y)

    # Pure-JAX reference mirroring the kernel's mixed precision
    # (bf16 matmul operands, f32 accumulation, exact-erf GELU).
    M = B * N
    xc = x.reshape(M, in_features).astype(compute_dtype)
    h_ref = jnp.dot(xc, w1.astype(compute_dtype),
                    preferred_element_type=jnp.float32) + b1
    h_ref = jax.nn.gelu(h_ref, approximate=False)
    y_ref = jnp.dot(h_ref.astype(compute_dtype), w2.astype(compute_dtype),
                    preferred_element_type=jnp.float32) + b2
    y_ref = y_ref.astype(x.dtype).reshape(B, N, out_features)

    assert y.shape == (B, N, out_features)
    assert jnp.allclose(y, y_ref, atol=1e-4, rtol=1e-3), \
        float(jnp.max(jnp.abs(y - y_ref)))

    print("KERNEL_OK")
</pallas_src>

<mosaic_0001>
module attributes {stable_mosaic.version = 11 : i64} {
  func.func @_mlp_kernel(%arg0: i32, %arg1: i32, %arg2: memref<16x128xf32, #tpu.memory_space<vmem>>, %arg3: memref<128x256xbf16, #tpu.memory_space<vmem>>, %arg4: memref<1x256xf32, #tpu.memory_space<vmem>>, %arg5: memref<256x128xbf16, #tpu.memory_space<vmem>>, %arg6: memref<1x128xf32, #tpu.memory_space<vmem>>, %arg7: memref<16x128xf32, #tpu.memory_space<vmem>>, %arg8: memref<16x128xf32, #tpu.memory_space<vmem>>) attributes {dimension_semantics = [#tpu.dimension_semantics<parallel>, #tpu.dimension_semantics<arbitrary>], iteration_bounds = array<i64: 1, 1>, scalar_prefetch = 0 : i64, scratch_operands = 1 : i64, tpu.core_type = #tpu.core_type<tc>, window_params = [{transform_indices = @transform_0, window_bounds = array<i64: 16, 128>}, {transform_indices = @transform_1, window_bounds = array<i64: 128, 256>}, {transform_indices = @transform_2, window_bounds = array<i64: 1, 256>}, {transform_indices = @transform_3, window_bounds = array<i64: 256, 128>}, {pipeline_mode = #tpu.pipeline_mode<synchronous>, transform_indices = @transform_4, window_bounds = array<i64: 1, 128>}, {transform_indices = @transform_5, window_bounds = array<i64: 16, 128>}]} {
    %c0_i32 = arith.constant 0 : i32
    %0 = arith.cmpi eq, %arg1, %c0_i32 : i32
    %1 = arith.extui %0 : i1 to i32
    %c0_i32_0 = arith.constant 0 : i32
    %2 = arith.cmpi ne, %1, %c0_i32_0 : i32
    scf.if %2 {
      %cst_18 = arith.constant 0.000000e+00 : f32
      %27 = vector.broadcast %cst_18 : f32 to vector<16x128xf32>
      %c0_19 = arith.constant 0 : index
      %c0_20 = arith.constant 0 : index
      %28 = vector.load %arg8[%c0_19, %c0_20] : memref<16x128xf32, #tpu.memory_space<vmem>>, vector<16x128xf32>
      tpu.vector_store %arg8[%c0_19, %c0_20], %27 {strides = array<i32>} : memref<16x128xf32, #tpu.memory_space<vmem>>, vector<16x128xf32>,
    } else {
    }
    %c0 = arith.constant 0 : index
    %c0_1 = arith.constant 0 : index
    %3 = vector.load %arg2[%c0, %c0_1] : memref<16x128xf32, #tpu.memory_space<vmem>>, vector<16x128xf32>
    %4 = arith.truncf %3 : vector<16x128xf32> to vector<16x128xbf16>
    %c0_2 = arith.constant 0 : index
    %c0_3 = arith.constant 0 : index
    %5 = vector.load %arg3[%c0_2, %c0_3] : memref<128x256xbf16, #tpu.memory_space<vmem>>, vector<128x256xbf16>
    %cst = arith.constant dense<0.000000e+00> : vector<16x256xf32>
    %6 = tpu.matmul %4, %5, %cst {dimension_numbers = #tpu.dot_dimension_numbers<[1], [0], [0], [1], [0, 0, 1, 1], [], []>} : vector<16x128xbf16>, vector<128x256xbf16>, vector<16x256xf32> -> vector<16x256xf32>
    %c0_4 = arith.constant 0 : index
    %c0_5 = arith.constant 0 : index
    %7 = vector.load %arg4[%c0_4, %c0_5] : memref<1x256xf32, #tpu.memory_space<vmem>>, vector<1x256xf32>
    %8 = vector.broadcast %7 : vector<1x256xf32> to vector<16x256xf32>
    %9 = arith.addf %6, %8 : vector<16x256xf32>
    %cst_6 = arith.constant 5.000000e-01 : f32
    %10 = vector.broadcast %cst_6 : f32 to vector<16x256xf32>
    %11 = arith.mulf %10, %9 : vector<16x256xf32>
    %cst_7 = arith.constant 0.707106769 : f32
    %12 = vector.broadcast %cst_7 : f32 to vector<16x256xf32>
    %13 = arith.mulf %9, %12 : vector<16x256xf32>
    %14 = math.erf %13 : vector<16x256xf32>
    %cst_8 = arith.constant 1.000000e+00 : f32
    %15 = vector.broadcast %cst_8 : f32 to vector<16x256xf32>
    %16 = arith.addf %15, %14 : vector<16x256xf32>
    %17 = arith.mulf %11, %16 : vector<16x256xf32>
    %c0_9 = arith.constant 0 : index
    %c0_10 = arith.constant 0 : index
    %18 = vector.load %arg8[%c0_9, %c0_10] : memref<16x128xf32, #tpu.memory_space<vmem>>, vector<16x128xf32>
    %19 = arith.truncf %17 : vector<16x256xf32> to vector<16x256xbf16>
    %c0_11 = arith.constant 0 : index
    %c0_12 = arith.constant 0 : index
    %20 = vector.load %arg5[%c0_11, %c0_12] : memref<256x128xbf16, #tpu.memory_space<vmem>>, vector<256x128xbf16>
    %cst_13 = arith.constant dense<0.000000e+00> : vector<16x128xf32>
    %21 = tpu.matmul %19, %20, %cst_13 {dimension_numbers = #tpu.dot_dimension_numbers<[1], [0], [0], [1], [0, 0, 1, 1], [], []>} : vector<16x256xbf16>, vector<256x128xbf16>, vector<16x128xf32> -> vector<16x128xf32>
    %22 = arith.addf %18, %21 : vector<16x128xf32>
    %c0_14 = arith.constant 0 : index
    %c0_15 = arith.constant 0 : index
    %23 = vector.load %arg8[%c0_14, %c0_15] : memref<16x128xf32, #tpu.memory_space<vmem>>, vector<16x128xf32>
    tpu.vector_store %arg8[%c0_14, %c0_15], %22 {strides = array<i32>} : memref<16x128xf32, #tpu.memory_space<vmem>>, vector<16x128xf32>,
    %c0_i32_16 = arith.constant 0 : i32
    %24 = arith.cmpi eq, %arg1, %c0_i32_16 : i32
    %25 = arith.extui %24 : i1 to i32
    %c0_i32_17 = arith.constant 0 : i32
    %26 = arith.cmpi ne, %25, %c0_i32_17 : i32
    scf.if %26 {
      %c0_18 = arith.constant 0 : index
      %c0_19 = arith.constant 0 : index
      %27 = vector.load %arg8[%c0_18, %c0_19] : memref<16x128xf32, #tpu.memory_space<vmem>>, vector<16x128xf32>
      %c0_20 = arith.constant 0 : index
      %c0_21 = arith.constant 0 : index
      %28 = vector.load %arg6[%c0_20, %c0_21] : memref<1x128xf32, #tpu.memory_space<vmem>>, vector<1x128xf32>
      %29 = vector.broadcast %28 : vector<1x128xf32> to vector<16x128xf32>
      %30 = arith.addf %27, %29 : vector<16x128xf32>
      %c0_22 = arith.constant 0 : index
      %c0_23 = arith.constant 0 : index
      %31 = vector.load %arg7[%c0_22, %c0_23] : memref<16x128xf32, #tpu.memory_space<vmem>>, vector<16x128xf32>
      tpu.vector_store %arg7[%c0_22, %c0_23], %30 {strides = array<i32>} : memref<16x128xf32, #tpu.memory_space<vmem>>, vector<16x128xf32>,
    } else {
    }
    return
  }
  func.func @transform_0(%arg0: i32, %arg1: i32) -> (i32, i32) {
    %c0_i32 = arith.constant 0 : i32
    %c0_i32_0 = arith.constant 0 : i32
    return %arg0, %c0_i32 : i32, i32
  }
  func.func @transform_1(%arg0: i32, %arg1: i32) -> (i32, i32) {
    %c0_i32 = arith.constant 0 : i32
    %c0_i32_0 = arith.constant 0 : i32
    return %c0_i32, %arg1 : i32, i32
  }
  func.func @transform_2(%arg0: i32, %arg1: i32) -> (i32, i32) {
    %c0_i32 = arith.constant 0 : i32
    %c0_i32_0 = arith.constant 0 : i32
    return %c0_i32, %arg1 : i32, i32
  }
  func.func @transform_3(%arg0: i32, %arg1: i32) -> (i32, i32) {
    %c0_i32 = arith.constant 0 : i32
    %c0_i32_0 = arith.constant 0 : i32
    return %arg1, %c0_i32 : i32, i32
  }
  func.func @transform_4(%arg0: i32, %arg1: i32) -> (i32, i32) {
    %c0_i32 = arith.constant 0 : i32
    %c0_i32_0 = arith.constant 0 : i32
    %c0_i32_1 = arith.constant 0 : i32
    return %c0_i32, %c0_i32_0 : i32, i32
  }
  func.func @transform_5(%arg0: i32, %arg1: i32) -> (i32, i32) {
    %c0_i32 = arith.constant 0 : i32
    %c0_i32_0 = arith.constant 0 : i32
    return %arg0, %c0_i32 : i32, i32
  }
}

</mosaic_0001>

<bundles_post_ra>
// kernel: _mlp_forward.1
= control target key start
LH: loop header
LB: loop body
LE: loop exit
PB: predicated region body
PF: predicated region fallthrough
CT: control target
= control target key end

     0   :  { %10 = vsyncpa [#allocation4], 0  ;;  %s665_s0 = inlined_call_operand.vmem [shape: f32[16,128], index: 0, kind: input, shape index: {}]   ;;  %s666_s1 = inlined_call_operand.hbm [shape: bf16[128,256], index: 1, kind: input, shape index: {}]   ;;  %s667_s2 = inlined_call_operand.vmem [shape: f32[1,256], index: 2, kind: input, shape index: {}]   ;;  %s668_s3 = inlined_call_operand.hbm [shape: bf16[256,128], index: 3, kind: input, shape index: {}]   ;;  %s669_s4 = inlined_call_operand.vmem [shape: f32[1,128], index: 4, kind: input, shape index: {}]   ;;  %s670_s5 = inlined_call_operand.vmem [shape: f32[16,128], index: 5, kind: output, shape index: {}]  }
   0x1   :  { %11 = vsyncpa [#allocation6], 0  ;;  %s586_s18 = smov [#allocation3]   ;;  %s538_s22 = scalar_lea.hbm %s666_s1, 2048 }
   0x2   :  { %s19_s19 = sshll.u32 %s586_s18, 4  ;;  %p539_p0 = scmp.ne.s32.totalorder %s666_s1, %s538_s22  ;;  %s20_s19 = int_to_ptr.vmem [resolvable:$true] %s19_s19 }
   0x3   :  { %p542_p1 = scmp.lt.u32.totalorder %s538_s22, %s666_s1 }
   0x5   :  { %p544_p2 = pnand %p542_p1, %p539_p0 }
   0x7   :  { %547 = shalt.err (!%p544_p2)
}
   0x8   :  { %s548_s27 = scalar_lea.vmem %s20_s19, 2048  ;;  %p553_p4 = scmp.lt.s32.totalorder %s20_s19, %s20_s19 }
   0x9   :  { %p549_p3 = scmp.ne.s32.totalorder %s20_s19, %s548_s27  ;;  %p554_p5 = scmp.lt.s32.totalorder %s548_s27, %s548_s27 }
   0xb   :  { %p555_p6 = por %p554_p5, %p553_p4 }
   0xd   :  { %p556_p7 = pnand %p555_p6, %p549_p3 }
   0xf   :  { %559 = shalt.err (!%p556_p7)
}
  0x10   :  { %s587_s28 = smov 128   ;;  %s588_s29 = smov 8  }
  0x11   :  { %25 = dma.hbm_to_vmem [thread:$0]  %s666_s1, 2048, %s20_s19, [#allocation4], %s587_s28, %s587_s28, %s588_s29  }
  0x12   :  { %s589_s7 = smov [#allocation5]   ;;  %s560_s11 = scalar_lea.hbm %s668_s3, 2048 }
  0x13   :  { %s33_s8 = sshll.u32 %s589_s7, 4  ;;  %p561_p8 = scmp.ne.s32.totalorder %s668_s3, %s560_s11  ;;  %s34_s8 = int_to_ptr.vmem [resolvable:$true] %s33_s8 }
  0x14   :  { %p564_p9 = scmp.lt.u32.totalorder %s560_s11, %s668_s3 }
  0x16   :  { %p566_p10 = pnand %p564_p9, %p561_p8 }
  0x18   :  { %569 = shalt.err (!%p566_p10)
}
  0x19   :  { %s570_s16 = scalar_lea.vmem %s34_s8, 2048  ;;  %p575_p12 = scmp.lt.s32.totalorder %s34_s8, %s34_s8 }
  0x1a   :  { %p571_p11 = scmp.ne.s32.totalorder %s34_s8, %s570_s16  ;;  %p576_p13 = scmp.lt.s32.totalorder %s570_s16, %s570_s16 }
  0x1c   :  { %p577_p0 = por %p576_p13, %p575_p12 }
  0x1e   :  { %p578_p1 = pnand %p577_p0, %p571_p11 }
  0x20   :  { %581 = shalt.err (!%p578_p1)
}
  0x21   :  { %s590_s1 = smov 64   ;;  %s591_s17 = smov 4  }
  0x22   :  { %39 = dma.hbm_to_vmem [thread:$0]  %s668_s3, 2048, %s34_s8, [#allocation6], %s590_s1, %s590_s1, %s591_s17  }
  0x23   :  { %582 = dma.done.wait [#allocation4], 2048  }
  0x24   :  { %583 = vsyncadd [#allocation4], 4294965248 }
  0x25   :  { %584 = dma.done.wait [#allocation6], 2048  }
  0x26   :  { %585 = vsyncadd [#allocation6], 4294965248  ;;  %v592_v0 = vmov 0   ;;  %v490_v1 = vld [vmem:[#allocation3 + $0x4] ss:$8 sps:$4 sm:$0xff]   ;;  %v518_v24 = vld [vmem:[#allocation5 + $0x50] sm:$0xff]   ;;  %v76_v36 = vlaneseq }
  0x27   :  { %198 = vmatprep.mubr.bf16.mxu0 %v592_v0  ;;  %v492_v2 = vld [vmem:[#allocation3] ss:$8 sps:$4 sm:$0xff]   ;;  %166 = vmatprep.subr.bf16.mxu0 %v490_v1  ;;  %v493_v3 = vld [vmem:[#allocation3 + $0x14] ss:$8 sps:$4 sm:$0xff]   ;;  %v495_v4 = vld [vmem:[#allocation3 + $0x10] ss:$8 sps:$4 sm:$0xff]  }
  0x28   :  { %167 = vmatpush1.bf16.msra.mxu0 %v492_v2  ;;  %v496_v5 = vld [vmem:[#allocation3 + $0x24] ss:$8 sps:$4 sm:$0xff]   ;;  %v498_v6 = vld [vmem:[#allocation3 + $0x20] ss:$8 sps:$4 sm:$0xff]   ;;  %v499_v7 = vld [vmem:[#allocation3 + $0x34] ss:$8 sps:$4 sm:$0xff]  }
  0x29   :  { %168 = vmatprep.subr.bf16.mxu0 %v493_v3  ;;  %v501_v8 = vld [vmem:[#allocation3 + $0x30] ss:$8 sps:$4 sm:$0xff]   ;;  %v502_v9 = vld [vmem:[#allocation3 + $0x44] ss:$8 sps:$4 sm:$0xff]   ;;  %v504_v11 = vld [vmem:[#allocation3 + $0x40] ss:$8 sps:$4 sm:$0xff]  }
  0x2a   :  { %v514_v10 = vld [vmem:[#allocation5 + $0x40] sm:$0xff]   ;;  %v516_v13 = vld [vmem:[#allocation5 + $0x48] sm:$0xff]   ;;  %v505_v14 = vld [vmem:[#allocation3 + $0x54] ss:$8 sps:$4 sm:$0xff]   ;;  %v77_v37 = vshrl.u32 %v76_v36, 7 }
  0x2b   :  { %v515_v12 = vld [vmem:[#allocation5] sm:$0xff]   ;;  %461 = vmatprep.subr.bf16.mxu1 %v514_v10  ;;  %v517_v15 = vld [vmem:[#allocation5 + $0x8] sm:$0xff]   ;;  %v507_v16 = vld [vmem:[#allocation3 + $0x50] ss:$8 sps:$4 sm:$0xff]  }
  0x2c   :  { %169 = vmatpush1.bf16.msra.mxu0 %v495_v4  ;;  %462 = vmatpush3.bf16.msra.mxu1 %v515_v12  ;;  %v508_v17 = vld [vmem:[#allocation3 + $0x64] ss:$8 sps:$4 sm:$0xff]   ;;  %v510_v18 = vld [vmem:[#allocation3 + $0x60] ss:$8 sps:$4 sm:$0xff]   ;;  %v511_v19 = vld [vmem:[#allocation3 + $0x74] ss:$8 sps:$4 sm:$0xff]  }
  0x2d   :  { %170 = vmatprep.subr.bf16.mxu0 %v496_v5  ;;  %463 = vmatprep.subr.bf16.mxu1 %v516_v13  ;;  %v513_v20 = vld [vmem:[#allocation3 + $0x70] ss:$8 sps:$4 sm:$0xff]   ;;  %v55_v21 = vld [vmem:[%s665_s0] sm:$0xff]  ;;  %v56_v22 = vld [vmem:[%s665_s0 + $0x8] sm:$0xff]  ;;  %v78_v38 = vsub.s32 0, %v77_v37  ;;  %v82_v40 = vsub.s32 1, %v77_v37 }
  0x2e   :  { %v57_v23 = vpack.c.bf16 %v56_v22, %v55_v21  ;;  %v519_v25 = vld [vmem:[#allocation5 + $0x10] sm:$0xff]   ;;  %v520_v26 = vld [vmem:[#allocation5 + $0x58] sm:$0xff]   ;;  %v522_v28 = vld [vmem:[#allocation5 + $0x60] sm:$0xff]  }
  0x2f   :  { %v521_v27 = vld [vmem:[#allocation5 + $0x18] sm:$0xff]   ;;  %v523_v29 = vld [vmem:[#allocation5 + $0x20] sm:$0xff]   ;;  %v524_v30 = vld [vmem:[#allocation5 + $0x68] sm:$0xff]  }
  0x30   :  { %171 = vmatpush1.bf16.msra.mxu0 %v498_v6  ;;  %464 = vmatpush3.bf16.msra.mxu1 %v517_v15  ;;  %v525_v31 = vld [vmem:[#allocation5 + $0x28] sm:$0xff]   ;;  %v526_v32 = vld [vmem:[#allocation5 + $0x70] sm:$0xff]   ;;  %v528_v34 = vld [vmem:[#allocation5 + $0x78] sm:$0xff]  }
  0x31   :  { %172 = vmatprep.subr.bf16.mxu0 %v499_v7  ;;  %465 = vmatprep.subr.bf16.mxu1 %v518_v24  ;;  %v527_v33 = vld [vmem:[#allocation5 + $0x30] sm:$0xff]   ;;  %v529_v35 = vld [vmem:[#allocation5 + $0x38] sm:$0xff]   ;;  %v74_v39 = vld [vmem:[%s667_s2] sm:$0x3] }
  0x32   :  { %v79_v41 = vrot.slane %v74_v39, %v78_v38  ;;  %v83_v42 = vrot.slane %v74_v39, %v82_v40 }
  0x34   :  { %173 = vmatpush1.bf16.msra.mxu0 %v501_v8  ;;  %466 = vmatpush3.bf16.msra.mxu1 %v519_v25 }
  0x35   :  { %174 = vmatprep.subr.bf16.mxu0 %v502_v9  ;;  %467 = vmatprep.subr.bf16.mxu1 %v520_v26 }
  0x38   :  { %175 = vmatpush1.bf16.msra.mxu0 %v504_v11  ;;  %468 = vmatpush3.bf16.msra.mxu1 %v521_v27  ;;  %v460_v11 = vld [vmem:[%s669_s4] ss:$0 sm:$0xff] }
  0x39   :  { %176 = vmatprep.subr.bf16.mxu0 %v505_v14  ;;  %469 = vmatprep.subr.bf16.mxu1 %v522_v28 }
  0x3c   :  { %177 = vmatpush1.bf16.msra.mxu0 %v507_v16  ;;  %470 = vmatpush3.bf16.msra.mxu1 %v523_v29 }
  0x3d   :  { %178 = vmatprep.subr.bf16.mxu0 %v508_v17  ;;  %471 = vmatprep.subr.bf16.mxu1 %v524_v30 }
  0x40   :  { %179 = vmatpush1.bf16.msra.mxu0 %v510_v18  ;;  %472 = vmatpush3.bf16.msra.mxu1 %v525_v31 }
  0x41   :  { %180 = vmatprep.subr.bf16.mxu0 %v511_v19  ;;  %473 = vmatprep.subr.bf16.mxu1 %v526_v32 }
  0x44   :  { %181 = vmatpush1.bf16.msra.mxu0 %v513_v20  ;;  %474 = vmatpush3.bf16.msra.mxu1 %v527_v33 }
  0x45   :  { %475 = vmatprep.subr.bf16.mxu1 %v528_v34 }
  0x47   :  { %199 = vmatmul.mubr.bf16.vlgmr.msra.gmra.mrb[0].mxu0 %v57_v23 }
  0x48   :  { %476 = vmatpush3.bf16.msra.mxu1 %v529_v35 }
 0x11a   :  { %v200_v43 = vpop.f32.mrb[0].mxu0 }
 0x11b   :  { %v201_v44 = vadd.f32 %v200_v43, %v79_v41  ;;  %v202_v45 = vpop.f32.mrb[1].mxu0 }
 0x11c   :  { %v203_v46 = vadd.f32 %v202_v45, %v83_v42  ;;  %v204_v47 = vpop.f32.mrb[2].mxu0 }
 0x11d   :  { %v213_v48 = vmul.f32 0.70710677, %v201_v44  ;;  %v205_v49 = vadd.f32 %v204_v47, %v79_v41  ;;  %v206_v50 = vpop.f32.mrb[3].mxu0  ;;  %v209_v61 = vmul.f32 0.5, %v201_v44 }
 0x11e   :  { %v214_v51 = vmul.f32 0.70710677, %v203_v46  ;;  %v207_v52 = vadd.f32 %v206_v50, %v83_v42  ;;  %v210_v0 = vmul.f32 0.5, %v203_v46 }
 0x11f   :  { %530 = verf.f32 %v213_v48  ;;  %v215_v53 = vmul.f32 0.70710677, %v205_v49  ;;  %v211_v62 = vmul.f32 0.5, %v205_v49 }
 0x120   :  { %532 = verf.f32 %v214_v51  ;;  %v216_v54 = vmul.f32 0.70710677, %v207_v52  ;;  %v212_v1 = vmul.f32 0.5, %v207_v52 }
 0x121   :  { %534 = verf.f32 %v215_v53 }
 0x122   :  { %536 = verf.f32 %v216_v54 }
 0x129   :  { %v531_v55 = vpop.eup %530 }
 0x12a   :  { %v533_v56 = vpop.eup %532  ;;  %v221_v57 = vadd.f32 1.0, %v531_v55 }
 0x12b   :  { %v535_v58 = vpop.eup %534  ;;  %v222_v59 = vadd.f32 1.0, %v533_v56 }
 0x12c   :  { %v537_v60 = vpop.eup %536  ;;  %v223_v63 = vadd.f32 1.0, %v535_v58  ;;  %v225_v3 = vmul.f32 %v221_v57, %v209_v61 }
 0x12d   :  { %v224_v2 = vadd.f32 1.0, %v537_v60  ;;  %v226_v5 = vmul.f32 %v222_v59, %v210_v0 }
 0x12e   :  { %v227_v4 = vmul.f32 %v223_v63, %v211_v62 }
 0x12f   :  { %v228_v6 = vmul.f32 %v224_v2, %v212_v1 }
 0x130   :  { %v231_v7 = vpack.c.bf16 %v227_v4, %v225_v3 }
 0x131   :  { %v232_v8 = vpack.c.bf16 %v228_v6, %v226_v5 }
 0x133   :  { %393 = vmatprep.mubr.bf16.mxu1 %v232_v8 }
 0x134   :  { %394 = vmatmul.mubr.bf16.vlgmr.msra.gmra.mrb[0].mxu1 %v231_v7 }
 0x207   :  { %v477_v9 = vpop.f32.mrb[0].mxu1 }
 0x208   :  { %v478_v10 = vpop.f32.mrb[1].mxu1 }
 0x209   :  { %v479_v12 = vadd.f32 %v478_v10, %v477_v9  ;;  %v480_v13 = vpop.f32.mrb[2].mxu1 }
 0x20a   :  { %v481_v14 = vpop.f32.mrb[3].mxu1 }
 0x20b   :  { %v418_v15 = vadd.f32 %v479_v12, %v460_v11  ;;  %v482_v16 = vadd.f32 %v481_v14, %v480_v13 }
 0x20d   :  { %420 = vst [vmem:[%s670_s5] sm:$0xff] %v418_v15  ;;  %v419_v17 = vadd.f32 %v482_v16, %v460_v11 }
 0x20f   :  { %421 = vst [vmem:[%s670_s5 + $0x8] sm:$0xff] %v419_v17 }
 0x210   :  { %426 = vsyncpa [#allocation4], 1 }
 0x211   :  { %427 = vsyncpa [#allocation6], 1 }

</bundles_post_ra>
